<compile_context>
chip_gen: v7x
topology: tpu7x:2x2x1
jax: 0.10.0
libtpu: 0.0.40
codegen_flags: <defaults>
</compile_context>

<pallas_src>
import jax
import jax.numpy as jnp
from jax import lax
from jax.experimental import pallas as pl
from jax.experimental.pallas import tpu as pltpu


# Packed-slab row layout.
_SCALING_ROWS = slice(0, 3)   # rows 0..2
_ROT_ROW0 = 3                 # rows 3..6
_OPACITY_ROW = 7              # row 7
_NUM_ROWS = 8

_MAX_LANE_TILE = 64 * 1024    # 8 * 64K * 4B = 2 MiB / buffer; safe on v5e/v6e/v7x


# ---------------------------------------------------------------------------
# Pallas kernel: fused activations on the packed (8, TN) tile
# ---------------------------------------------------------------------------
def _gaussian_activation_kernel(x_ref, o_ref):
    # scaling activation: exp  (rows 0..2)
    o_ref[_SCALING_ROWS, :] = jnp.exp(x_ref[_SCALING_ROWS, :])

    # rotation activation: L2 normalize across the 4 quaternion rows.
    # torch.F.normalize: r / max(||r||, 1e-12)  ==  r * rsqrt(max(sum r^2, 1e-24))
    r0 = x_ref[_ROT_ROW0 + 0, :]
    r1 = x_ref[_ROT_ROW0 + 1, :]
    r2 = x_ref[_ROT_ROW0 + 2, :]
    r3 = x_ref[_ROT_ROW0 + 3, :]
    # explicit per-row sums stay on the VPU (no cross-lane XLU reduce)
    sumsq = r0 * r0 + r1 * r1 + r2 * r2 + r3 * r3
    inv_norm = lax.rsqrt(jnp.maximum(sumsq, 1e-24))   # EUP; exact F.normalize semantics
    o_ref[_ROT_ROW0 + 0, :] = r0 * inv_norm
    o_ref[_ROT_ROW0 + 1, :] = r1 * inv_norm
    o_ref[_ROT_ROW0 + 2, :] = r2 * inv_norm
    o_ref[_ROT_ROW0 + 3, :] = r3 * inv_norm

    # opacity activation: sigmoid  (row 7)  -> EUP logistic
    o_ref[_OPACITY_ROW, :] = jax.nn.sigmoid(x_ref[_OPACITY_ROW, :])


# ---------------------------------------------------------------------------
# Wrapper: pack to lane-dense (8, N), tile the lane axis, unpack
# ---------------------------------------------------------------------------
def gaussian_activations(scaling, rotation, opacity, *, lane_tile=None):
    """Apply GaussianModel forward activations with one fused Pallas kernel.

    scaling:  (N, 3) -> exp
    rotation: (N, 4) -> L2 normalize along dim 1 (eps=1e-12)
    opacity:  (N, 1) -> sigmoid
    """
    n = scaling.shape[0]
    assert rotation.shape == (n, 4) and opacity.shape == (n, 1)
    assert scaling.shape == (n, 3)

    # Lane-dense channel-major packing: (8, N) slab.  Transposes/concat here are
    # cheap XLA layout plumbing; they buy full-width vector stores in the kernel.
    packed = jnp.concatenate(
        [scaling.T.astype(jnp.float32),
         rotation.T.astype(jnp.float32),
         opacity.T.astype(jnp.float32)],
        axis=0)                                              # (8, N)

    # Tile the lane axis: as large as possible while keeping the double-buffered
    # in+out working set small vs. scoped VMEM on every TPU generation.
    if lane_tile is None:
        lane_tile = min(max(128, pl.next_power_of_2(n)), _MAX_LANE_TILE)
    assert lane_tile % 128 == 0

    n_pad = pl.cdiv(n, lane_tile) * lane_tile
    if n_pad != n:
        # Zero padding is safe: rotation columns of zeros give 0 * rsqrt(1e-24)=0.
        packed = jnp.pad(packed, ((0, 0), (0, n_pad - n)))

    grid = (n_pad // lane_tile,)
    block_spec = pl.BlockSpec((_NUM_ROWS, lane_tile), lambda i: (0, i))

    out_packed = pl.pallas_call(
        _gaussian_activation_kernel,
        out_shape=jax.ShapeDtypeStruct((_NUM_ROWS, n_pad), jnp.float32),
        grid_spec=pltpu.PrefetchScalarGridSpec(
            num_scalar_prefetch=0,
            grid=grid,
            in_specs=[block_spec],
            out_specs=block_spec,
        ),
        compiler_params=pltpu.CompilerParams(
            # "parallel" lets multi-step grids shard across v7x's two TensorCores.
            dimension_semantics=("parallel",),
            vmem_limit_bytes=32 * 1024 * 1024,
        ),
        cost_estimate=pl.CostEstimate(
            flops=9 * n,            # quaternion sumsq + scales
            transcendentals=5 * n,  # 3x exp + rsqrt + sigmoid per gaussian
            bytes_accessed=2 * _NUM_ROWS * n * 4,
        ),
    )(packed)

    out_packed = out_packed[:, :n]
    scaling_act = out_packed[_SCALING_ROWS, :].T                       # (N, 3)
    rotation_act = out_packed[_ROT_ROW0:_ROT_ROW0 + 4, :].T            # (N, 4)
    opacity_act = out_packed[_OPACITY_ROW:_OPACITY_ROW + 1, :].T       # (N, 1)
    return scaling_act, rotation_act, opacity_act


# ---------------------------------------------------------------------------
# Deterministic parameter initialization (mirrors GaussianModel._init_from_points)
# ---------------------------------------------------------------------------
def init_gaussian_params(key, num_points=256, sh_degree=3):
    k_pts, k_col = jax.random.split(key)

    # random points in [-1, 1)^3  (mirrors _init_random)
    points = (jax.random.uniform(k_pts, (num_points, 3)) - 0.5) * 2.0

    # colors -> 0-degree SH coefficient
    colors = jax.random.uniform(k_col, (num_points, 3))
    c0 = 0.28209479177387814
    fused_color = (colors - 0.5) / c0                       # (N, 3)

    n_sh = (sh_degree + 1) ** 2
    features_dc = fused_color[:, None, :]                   # (N, 1, 3)
    features_rest = jnp.zeros((num_points, n_sh - 1, 3), jnp.float32)

    # nearest-neighbor avg squared distance, mirroring sklearn kneighbors(4):
    # mean of the 3 nearest non-self squared distances.
    # TODO(synk): brute-force O(N^2) NN is fine for the N=256 test but should be
    # replaced by a spatial-hash / KD-tree approach at realistic Gaussian counts.
    diff = points[:, None, :] - points[None, :, :]
    d2 = jnp.sum(diff * diff, axis=-1)                      # (N, N)
    d2 = d2 + jnp.eye(num_points) * 1e10                    # exclude self
    nn3 = -jax.lax.top_k(-d2, 3)[0]                         # 3 smallest squared dists
    dist2 = jnp.mean(nn3, axis=1)                           # (N,)
    scaling = jnp.log(jnp.sqrt(dist2))[:, None].repeat(3, axis=1)   # (N, 3)

    rotation = jnp.zeros((num_points, 4), jnp.float32).at[:, 0].set(1.0)

    # inverse_sigmoid(0.1) with the module's 1e-8 epsilon
    p = 0.1
    opacity = jnp.full((num_points, 1), jnp.log(p / (1.0 - p + 1e-8)), jnp.float32)

    return dict(
        xyz=points.astype(jnp.float32),
        features_dc=features_dc.astype(jnp.float32),
        features_rest=features_rest,
        scaling=scaling.astype(jnp.float32),
        rotation=rotation,
        opacity=opacity,
    )


# ---------------------------------------------------------------------------
# Forward pass == GaussianModel.forward() -> GaussianParams
# ---------------------------------------------------------------------------
def gaussian_model_forward(params):
    scaling_act, rotation_act, opacity_act = gaussian_activations(
        params["scaling"], params["rotation"], params["opacity"])
    return dict(
        positions=params["xyz"],             # passthrough (get_xyz)
        features_dc=params["features_dc"],   # passthrough
        features_rest=params["features_rest"],
        scaling=scaling_act,                 # exp
        rotation=rotation_act,               # L2 normalize
        opacity=opacity_act,                 # sigmoid
    )


if __name__ == "__main__":
    key = jax.random.PRNGKey(0)
    params = init_gaussian_params(key, num_points=256, sh_degree=3)

    out = gaussian_model_forward(params)
    jax.block_until_ready(out)

    # reference check (plain JAX, mirrors the torch activations)
    ref_scaling = jnp.exp(params["scaling"])
    r = params["rotation"]
    ref_rotation = r / jnp.maximum(
        jnp.sqrt(jnp.sum(r * r, axis=-1, keepdims=True)), 1e-12)
    ref_opacity = jax.nn.sigmoid(params["opacity"])

    assert jnp.allclose(out["scaling"], ref_scaling, atol=1e-5, rtol=1e-5)
    assert jnp.allclose(out["rotation"], ref_rotation, atol=1e-6, rtol=1e-5)
    assert jnp.allclose(out["opacity"], ref_opacity, atol=1e-6, rtol=1e-5)
    assert out["positions"].shape == (256, 3)
    assert out["features_dc"].shape == (256, 1, 3)
    assert out["features_rest"].shape == (256, 15, 3)
    assert out["scaling"].shape == (256, 3)
    assert out["rotation"].shape == (256, 4)
    assert out["opacity"].shape == (256, 1)

    print("KERNEL_OK")
</pallas_src>

<mosaic_0001>
module attributes {stable_mosaic.version = 11 : i64} {
  func.func @_gaussian_activation_kernel(%arg0: i32, %arg1: memref<8x256xf32, #tpu.memory_space<vmem>>, %arg2: memref<8x256xf32, #tpu.memory_space<vmem>>) attributes {dimension_semantics = [#tpu.dimension_semantics<parallel>], iteration_bounds = array<i64: 1>, scalar_prefetch = 0 : i64, scratch_operands = 0 : i64, tpu.core_type = #tpu.core_type<tc>, window_params = [{transform_indices = @transform_0, window_bounds = array<i64: 8, 256>}, {transform_indices = @transform_1, window_bounds = array<i64: 8, 256>}]} {
    %c0 = arith.constant 0 : index
    %c0_0 = arith.constant 0 : index
    %0 = vector.load %arg1[%c0, %c0_0] : memref<8x256xf32, #tpu.memory_space<vmem>>, vector<3x256xf32>
    %1 = math.exp %0 : vector<3x256xf32>
    %c0_1 = arith.constant 0 : index
    %c0_2 = arith.constant 0 : index
    %2 = vector.load %arg2[%c0_1, %c0_2] : memref<8x256xf32, #tpu.memory_space<vmem>>, vector<3x256xf32>
    tpu.vector_store %arg2[%c0_1, %c0_2], %1 {strides = array<i32>} : memref<8x256xf32, #tpu.memory_space<vmem>>, vector<3x256xf32>,
    %c3 = arith.constant 3 : index
    %c0_3 = arith.constant 0 : index
    %3 = vector.load %arg1[%c3, %c0_3] : memref<8x256xf32, #tpu.memory_space<vmem>>, vector<1x256xf32>
    %4 = vector.shape_cast %3 : vector<1x256xf32> to vector<256xf32>
    %c4 = arith.constant 4 : index
    %c0_4 = arith.constant 0 : index
    %5 = vector.load %arg1[%c4, %c0_4] : memref<8x256xf32, #tpu.memory_space<vmem>>, vector<1x256xf32>
    %6 = vector.shape_cast %5 : vector<1x256xf32> to vector<256xf32>
    %c5 = arith.constant 5 : index
    %c0_5 = arith.constant 0 : index
    %7 = vector.load %arg1[%c5, %c0_5] : memref<8x256xf32, #tpu.memory_space<vmem>>, vector<1x256xf32>
    %8 = vector.shape_cast %7 : vector<1x256xf32> to vector<256xf32>
    %c6 = arith.constant 6 : index
    %c0_6 = arith.constant 0 : index
    %9 = vector.load %arg1[%c6, %c0_6] : memref<8x256xf32, #tpu.memory_space<vmem>>, vector<1x256xf32>
    %10 = vector.shape_cast %9 : vector<1x256xf32> to vector<256xf32>
    %11 = arith.mulf %4, %4 : vector<256xf32>
    %12 = arith.mulf %6, %6 : vector<256xf32>
    %13 = arith.addf %11, %12 : vector<256xf32>
    %14 = arith.mulf %8, %8 : vector<256xf32>
    %15 = arith.addf %13, %14 : vector<256xf32>
    %16 = arith.mulf %10, %10 : vector<256xf32>
    %17 = arith.addf %15, %16 : vector<256xf32>
    %cst = arith.constant 1.000000e-24 : f32
    %18 = vector.broadcast %cst : f32 to vector<256xf32>
    %19 = arith.maximumf %17, %18 : vector<256xf32>
    %20 = math.rsqrt %19 : vector<256xf32>
    %21 = arith.mulf %4, %20 : vector<256xf32>
    %c3_7 = arith.constant 3 : index
    %c0_8 = arith.constant 0 : index
    %22 = vector.load %arg2[%c3_7, %c0_8] : memref<8x256xf32, #tpu.memory_space<vmem>>, vector<1x256xf32>
    %23 = vector.shape_cast %22 : vector<1x256xf32> to vector<256xf32>
    %24 = vector.shape_cast %21 : vector<256xf32> to vector<1x256xf32>
    tpu.vector_store %arg2[%c3_7, %c0_8], %24 {strides = array<i32>} : memref<8x256xf32, #tpu.memory_space<vmem>>, vector<1x256xf32>,
    %25 = arith.mulf %6, %20 : vector<256xf32>
    %c4_9 = arith.constant 4 : index
    %c0_10 = arith.constant 0 : index
    %26 = vector.load %arg2[%c4_9, %c0_10] : memref<8x256xf32, #tpu.memory_space<vmem>>, vector<1x256xf32>
    %27 = vector.shape_cast %26 : vector<1x256xf32> to vector<256xf32>
    %28 = vector.shape_cast %25 : vector<256xf32> to vector<1x256xf32>
    tpu.vector_store %arg2[%c4_9, %c0_10], %28 {strides = array<i32>} : memref<8x256xf32, #tpu.memory_space<vmem>>, vector<1x256xf32>,
    %29 = arith.mulf %8, %20 : vector<256xf32>
    %c5_11 = arith.constant 5 : index
    %c0_12 = arith.constant 0 : index
    %30 = vector.load %arg2[%c5_11, %c0_12] : memref<8x256xf32, #tpu.memory_space<vmem>>, vector<1x256xf32>
    %31 = vector.shape_cast %30 : vector<1x256xf32> to vector<256xf32>
    %32 = vector.shape_cast %29 : vector<256xf32> to vector<1x256xf32>
    tpu.vector_store %arg2[%c5_11, %c0_12], %32 {strides = array<i32>} : memref<8x256xf32, #tpu.memory_space<vmem>>, vector<1x256xf32>,
    %33 = arith.mulf %10, %20 : vector<256xf32>
    %c6_13 = arith.constant 6 : index
    %c0_14 = arith.constant 0 : index
    %34 = vector.load %arg2[%c6_13, %c0_14] : memref<8x256xf32, #tpu.memory_space<vmem>>, vector<1x256xf32>
    %35 = vector.shape_cast %34 : vector<1x256xf32> to vector<256xf32>
    %36 = vector.shape_cast %33 : vector<256xf32> to vector<1x256xf32>
    tpu.vector_store %arg2[%c6_13, %c0_14], %36 {strides = array<i32>} : memref<8x256xf32, #tpu.memory_space<vmem>>, vector<1x256xf32>,
    %c7 = arith.constant 7 : index
    %c0_15 = arith.constant 0 : index
    %37 = vector.load %arg1[%c7, %c0_15] : memref<8x256xf32, #tpu.memory_space<vmem>>, vector<1x256xf32>
    %38 = vector.shape_cast %37 : vector<1x256xf32> to vector<256xf32>
    %39 = arith.negf %38 : vector<256xf32>
    %40 = math.exp %39 : vector<256xf32>
    %cst_16 = arith.constant 1.000000e+00 : f32
    %41 = vector.broadcast %cst_16 : f32 to vector<256xf32>
    %42 = arith.addf %41, %40 : vector<256xf32>
    %43 = arith.divf %41, %42 : vector<256xf32>
    %c7_17 = arith.constant 7 : index
    %c0_18 = arith.constant 0 : index
    %44 = vector.load %arg2[%c7_17, %c0_18] : memref<8x256xf32, #tpu.memory_space<vmem>>, vector<1x256xf32>
    %45 = vector.shape_cast %44 : vector<1x256xf32> to vector<256xf32>
    %46 = vector.shape_cast %43 : vector<256xf32> to vector<1x256xf32>
    tpu.vector_store %arg2[%c7_17, %c0_18], %46 {strides = array<i32>} : memref<8x256xf32, #tpu.memory_space<vmem>>, vector<1x256xf32>,
    return
  }
  func.func @transform_0(%arg0: i32) -> (i32, i32) {
    %c0_i32 = arith.constant 0 : i32
    %c0_i32_0 = arith.constant 0 : i32
    return %c0_i32, %arg0 : i32, i32
  }
  func.func @transform_1(%arg0: i32) -> (i32, i32) {
    %c0_i32 = arith.constant 0 : i32
    %c0_i32_0 = arith.constant 0 : i32
    return %c0_i32, %arg0 : i32, i32
  }
}

</mosaic_0001>

<bundles_post_ra>
// kernel: tpu_custom_call.1
= control target key start
LH: loop header
LB: loop body
LE: loop exit
PB: predicated region body
PF: predicated region fallthrough
CT: control target
= control target key end

     0   :  { %6 = vsyncpa [#allocation3], 0  ;;  %s189_s0 = inlined_call_operand.hbm [shape: f32[8,256], index: 0, kind: input, shape index: {}]   ;;  %s190_s1 = inlined_call_operand.hbm [shape: f32[8,256], index: 1, kind: output, shape index: {}]  }
   0x1   :  { %7 = vsyncpa [#allocation4], 0  ;;  %s153_s6 = smov [#allocation2]   ;;  %s105_s10 = scalar_lea.hbm %s189_s0, 256 }
   0x2   :  { %s14_s7 = sshll.u32 %s153_s6, 4  ;;  %p106_p0 = scmp.ne.s32.totalorder %s189_s0, %s105_s10  ;;  %s15_s7 = int_to_ptr.vmem [resolvable:$true] %s14_s7 }
   0x3   :  { %p109_p1 = scmp.lt.u32.totalorder %s105_s10, %s189_s0 }
   0x5   :  { %p111_p2 = pnand %p109_p1, %p106_p0 }
   0x7   :  { %114 = shalt.err (!%p111_p2)
}
   0x8   :  { %s115_s15 = scalar_lea.vmem %s15_s7, 256  ;;  %p120_p4 = scmp.lt.s32.totalorder %s15_s7, %s15_s7 }
   0x9   :  { %p116_p3 = scmp.ne.s32.totalorder %s15_s7, %s115_s15  ;;  %p121_p5 = scmp.lt.s32.totalorder %s115_s15, %s115_s15 }
   0xb   :  { %p122_p6 = por %p121_p5, %p120_p4 }
   0xd   :  { %p123_p7 = pnand %p122_p6, %p116_p3 }
   0xf   :  { %126 = shalt.err (!%p123_p7)
}
  0x10   :  { %17 = dma.hbm_to_vmem [thread:$0]  %s189_s0, 256, %s15_s7, [#allocation3]  }
  0x11   :  { %149 = dma.done.wait [#allocation3], 256  }
  0x12   :  { %150 = vsyncadd [#allocation3], 4294967040  ;;  %v21_v0 = vld [vmem:[#allocation2] sm:$0x7]  ;;  %v22_v1 = vld [vmem:[#allocation2 + $0x8] sm:$0x7]  ;;  %v47_v22 = vlaneseq }
  0x13   :  { %v23_v2 = vmul.f32 1.442695, %v21_v0  ;;  %v25_v3 = vmul.f32 1.442695, %v22_v1  ;;  %s154_s0 = smov [#allocation5]  }
  0x14   :  { %v30_v4 = vld [vmem:[#allocation2 + $0x3] ss:$8 sm:$0x3]  ;;  %v32_v5 = vld [vmem:[#allocation2 + $0x4] ss:$8 sm:$0x3] }
  0x15   :  { %95 = vpow2.f32 %v23_v2  ;;  %v34_v6 = vld [vmem:[#allocation2 + $0x5] ss:$8 sm:$0x3]  ;;  %v36_v7 = vld [vmem:[#allocation2 + $0x6] ss:$8 sm:$0x3]  ;;  %v37_v8 = vmul.f32 %v30_v4, %v30_v4  ;;  %v38_v9 = vmul.f32 %v32_v5, %v32_v5 }
  0x16   :  { %97 = vpow2.f32 %v25_v3  ;;  %v40_v10 = vmul.f32 %v34_v6, %v34_v6  ;;  %v67_v11 = vld [vmem:[#allocation2 + $0x7] ss:$8 sm:$0x3]  ;;  %v42_v13 = vmul.f32 %v36_v7, %v36_v7  ;;  %vm49_vm0 = vcmp.lt.s32.totalorder %v47_v22, 256  ;;  %s83_s18 = sshll.u32 %s154_s0, 4  ;;  %s84_s18 = int_to_ptr.vmem [resolvable:$true] %s83_s18 }
  0x17   :  { %v39_v12 = vadd.f32 %v38_v9, %v37_v8  ;;  %v92_v14 = vmul.f32 -1.442695, %v67_v11  ;;  %s127_s19 = scalar_lea.vmem %s84_s18, 256  ;;  %p132_p9 = scmp.lt.s32.totalorder %s84_s18, %s84_s18 }
  0x18   :  { %p128_p8 = scmp.ne.s32.totalorder %s84_s18, %s127_s19  ;;  %p133_p10 = scmp.lt.s32.totalorder %s127_s19, %s127_s19 }
  0x19   :  { %v41_v15 = vadd.f32 %v40_v10, %v39_v12  ;;  %99 = vpow2.f32 %v92_v14 }
  0x1a   :  { %p134_p11 = por %p133_p10, %p132_p9 }
  0x1b   :  { %v43_v16 = vadd.f32 %v42_v13, %v41_v15 }
  0x1c   :  { %p135_p12 = pnand %p134_p11, %p128_p8 }
  0x1d   :  { %v44_v17 = vmax.f32 %v43_v16, 1e-24 }
  0x1f   :  { %v96_v18 = vpop.eup %95  ;;  %101 = vrsqrt.f32 %v44_v17 }
  0x20   :  { %v98_v19 = vpop.eup %97  ;;  %27 = vst [vmem:[#allocation5] sm:$0x7] %v96_v18 }
  0x21   :  { %28 = vst [vmem:[#allocation5 + $0x8] sm:$0x7] %v98_v19 }
  0x23   :  { %v100_v20 = vpop.eup %99 }
  0x24   :  { %v71_v21 = vadd.f32 1.0, %v100_v20 }
  0x26   :  { %103 = vrcp.f32 %v71_v21 }
  0x29   :  { %v102_v23 = vpop.eup %101 }
  0x2a   :  { %v46_v24 = vmul.f32 %v102_v23, %v30_v4  ;;  %v54_v25 = vmul.f32 %v102_v23, %v32_v5  ;;  %v58_v26 = vmul.f32 %v102_v23, %v34_v6  ;;  %v62_v27 = vmul.f32 %v102_v23, %v36_v7 }
  0x2c   :  { %52 = vst.msk [vmem:[#allocation5 + $0x3] ss:$8 sm:$0x3] %vm49_vm0, %v46_v24  ;;  %56 = vst.msk [vmem:[#allocation5 + $0x4] ss:$8 sm:$0x3] %vm49_vm0, %v54_v25 }
  0x2d   :  { %60 = vst.msk [vmem:[#allocation5 + $0x5] ss:$8 sm:$0x3] %vm49_vm0, %v58_v26  ;;  %64 = vst.msk [vmem:[#allocation5 + $0x6] ss:$8 sm:$0x3] %vm49_vm0, %v62_v27 }
  0x30   :  { %v104_v28 = vpop.eup %103 }
  0x31   :  { %75 = vst.msk [vmem:[#allocation5 + $0x7] ss:$8 sm:$0x3] %vm49_vm0, %v104_v28 }
  0x32   :  { %138 = shalt.err (!%p135_p12)
}
  0x33   :  { %s139_s22 = scalar_lea.hbm %s190_s1, 256 }
  0x34   :  { %p140_p13 = scmp.ne.s32.totalorder %s190_s1, %s139_s22  ;;  %p143_p0 = scmp.lt.u32.totalorder %s139_s22, %s190_s1 }
  0x36   :  { %p145_p1 = pnand %p143_p0, %p140_p13 }
  0x38   :  { %148 = shalt.err (!%p145_p1)
}
  0x39   :  { %86 = dma.vmem_to_hbm [thread:$0]  %s84_s18, 256, %s190_s1, [#allocation4]  }
  0x3a   :  { %151 = dma.done.wait [#allocation4], 256  }
  0x3b   :  { %152 = vsyncadd [#allocation4], 4294967040 }
  0x3c   :  { %90 = vsyncpa [#allocation3], 1 }
  0x3d   :  { %91 = vsyncpa [#allocation4], 1 }

</bundles_post_ra>
